<compile_context>
chip_gen: v5e
topology: v5e:2x2
jax: 0.10.0
libtpu: 0.0.40
codegen_flags: <defaults>
</compile_context>

<pallas_src>
import functools

import jax
import jax.numpy as jnp
from jax.experimental import pallas as pl
from jax.experimental.pallas import tpu as pltpu

ALPHA = 0.5      # class constants of the PyTorch module
BETA = 0.5       # unused by the torch forward math (kept for parity)
CE_RATIO = 0.5

_SUBLANES = 8                          # leading dim of the zero-copy (8, n//8) view
_CHUNK_LANES = 512                     # in-kernel sub-chunk: (8, 512) f32 = 4 vregs
_TARGET_BLOCK_BYTES = 2 * 1024 * 1024  # ~2 MiB per input block (roofline-friendly)


def _combo_sums_kernel(inp_ref, tgt_ref, sums_ref,
                       acc_xt, acc_x, acc_t, acc_ce,
                       *, chunk, n_chunks, last_valid, alpha, eps,
                       binary_targets):
    """Accumulate sum(x*t), sum(x), sum(t), sum(ce) over (8, block_lanes) tiles.

    last_valid: number of valid lane columns in the LAST grid block (equals the
    full block width when the columns divide evenly; static Python int).
    """
    step = pl.program_id(0)
    last = pl.num_programs(0) - 1
    block_lanes = chunk * n_chunks

    c1 = -float(alpha)                       # CE constants folded at trace time
    c2 = -float(alpha) * (1.0 - float(alpha))

    @pl.when(step == 0)
    def _():
        acc_xt[...] = jnp.zeros_like(acc_xt)
        acc_x[...] = jnp.zeros_like(acc_x)
        acc_t[...] = jnp.zeros_like(acc_t)
        acc_ce[...] = jnp.zeros_like(acc_ce)

    def accumulate(valid_cols):
        # Running partial sums stay in vregs; the VMEM accumulators are only
        # read/written once per tile (keeps the vst slot off the critical path).
        s_xt = jnp.zeros((_SUBLANES, chunk), jnp.float32)
        s_x = jnp.zeros((_SUBLANES, chunk), jnp.float32)
        s_t = jnp.zeros((_SUBLANES, chunk), jnp.float32)
        s_ce = jnp.zeros((_SUBLANES, chunk), jnp.float32)
        # Static chunk loop: offsets are compile-time constants, so every load
        # is an aligned full-vreg load (n_chunks <= 128 by construction).
        for c in range(n_chunks):
            off = c * chunk
            x = inp_ref[:, pl.ds(off, chunk)].astype(jnp.float32)
            t = tgt_ref[:, pl.ds(off, chunk)].astype(jnp.float32)
            if valid_cols is not None:
                col = jax.lax.broadcasted_iota(
                    jnp.int32, (_SUBLANES, chunk), 1) + off
                ok = col < valid_cols
                x = jnp.where(ok, x, 0.0)   # OOB tail may be NaN/Inf garbage:
                t = jnp.where(ok, t, 0.0)   # mask every contribution explicitly.
            xc = jnp.clip(x, eps, 1.0 - eps)
            if binary_targets:
                # Single-log fast path (valid only for 0/1 targets).
                pos = t > 0.5
                ce = (jnp.where(pos, c1, c2)
                      * jnp.log(jnp.where(pos, xc, 1.0 - xc)))
            else:
                ce = (c1 * (t * jnp.log(xc))
                      + c2 * ((1.0 - t) * jnp.log(1.0 - xc)))
            if valid_cols is not None:
                ce = jnp.where(ok, ce, 0.0)
            s_xt = s_xt + x * t
            s_x = s_x + x
            s_t = s_t + t
            s_ce = s_ce + ce
        acc_xt[...] += s_xt
        acc_x[...] += s_x
        acc_t[...] += s_t
        acc_ce[...] += s_ce

    if last_valid == block_lanes:
        accumulate(None)                  # every block fully valid: no masking
    else:
        @pl.when(step != last)
        def _():
            accumulate(None)

        @pl.when(step == last)
        def _():
            accumulate(last_valid)        # static constant -> cheap mask

    # Single cross-lane reduction + scalar SMEM stores, only on the last step.
    @pl.when(step == last)
    def _():
        sums_ref[0] = jnp.sum(acc_xt[...])
        sums_ref[1] = jnp.sum(acc_x[...])
        sums_ref[2] = jnp.sum(acc_t[...])
        sums_ref[3] = jnp.sum(acc_ce[...])


def combo_loss(inputs, targets, smooth=1.0, eps=1e-9,
               assume_binary_targets=False):
    """Pallas implementation of ComboLoss.forward.

    Note: like the float32 PyTorch reference, eps=1e-9 means the upper clamp
    1.0 - eps rounds to 1.0 in f32, so an input of exactly 1.0 with target < 1
    yields -inf/NaN; pass a representable eps (e.g. 1e-7) if robustness matters.
    """
    x = inputs.reshape(-1)
    t = targets.reshape(-1)
    assert x.shape == t.shape, "inputs and targets must have the same size"
    n = x.shape[0]

    # Zero-copy 2-D view: (8, n // 8). Requires n % 8 == 0 (true for any
    # practical NCHW / mask shape); the rare ragged case falls back to a tiny
    # zero pad whose CE contribution is removed analytically below.
    pad = (-n) % _SUBLANES
    if pad:
        # TODO(synk): this rare fallback still copies the inputs once via pad.
        x = jnp.pad(x, (0, pad))
        t = jnp.pad(t, (0, pad))
    cols = (n + pad) // _SUBLANES
    x2 = x.reshape(_SUBLANES, cols)   # free reshape, native dtype (no upcast copy)
    t2 = t.reshape(_SUBLANES, cols)

    itemsize = max(jnp.dtype(x2.dtype).itemsize, jnp.dtype(t2.dtype).itemsize)
    if cols < 128:
        bl = cols                     # single block == full array dims
    else:
        bl_target = max(512, _TARGET_BLOCK_BYTES // (_SUBLANES * itemsize))
        bl = min(bl_target, (cols // 128) * 128)
    grid = pl.cdiv(cols, bl)
    last_valid = cols - (grid - 1) * bl   # static; == bl when evenly divisible

    chunk = bl
    for cand in (_CHUNK_LANES, 256, 128):
        if bl % cand == 0:
            chunk = cand
            break
    n_chunks = bl // chunk

    kernel = functools.partial(
        _combo_sums_kernel,
        chunk=chunk, n_chunks=n_chunks, last_valid=last_valid,
        alpha=float(ALPHA), eps=float(eps),
        binary_targets=bool(assume_binary_targets))

    def in_spec():
        shape = (_SUBLANES, bl)
        index_map = lambda i: (0, i)
        if grid >= 4:
            try:   # deeper pipeline hides per-step DMA jitter on long streams
                return pl.BlockSpec(shape, index_map,
                                    pipeline_mode=pl.Buffered(3))
            except Exception:
                pass
        return pl.BlockSpec(shape, index_map)

    # TODO(synk): v7x: split the column range across both TensorCores with a
    # leading "parallel" grid axis + per-core accumulators (2x on v7x).
    sums = pl.pallas_call(
        kernel,
        out_shape=jax.ShapeDtypeStruct((4,), jnp.float32),
        grid=(grid,),
        in_specs=[in_spec(), in_spec()],
        out_specs=pl.BlockSpec(memory_space=pltpu.MemorySpace.SMEM),
        scratch_shapes=[pltpu.VMEM((_SUBLANES, chunk), jnp.float32)
                        for _ in range(4)],
        compiler_params=pltpu.CompilerParams(
            dimension_semantics=("arbitrary",),
            vmem_limit_bytes=32 * 1024 * 1024),
    )(x2, t2)

    inter, x_sum, t_sum, ce_sum = sums[0], sums[1], sums[2], sums[3]

    if pad:
        # Remove the CE contribution of the (<8) zero-padded elements
        # (x=0 -> clamped to eps, t=0), using the same f32 math as the kernel.
        pad_ce = (jnp.float32(-ALPHA * (1.0 - ALPHA))
                  * jnp.log(jnp.float32(1.0) - jnp.float32(eps)))
        ce_sum = ce_sum - jnp.float32(pad) * pad_ce

    dice = (2.0 * inter + smooth) / (x_sum + t_sum + smooth)
    weighted_ce = ce_sum / jnp.float32(n)
    return CE_RATIO * weighted_ce - (1.0 - CE_RATIO) * dice


def _reference(inputs, targets, smooth=1.0, eps=1e-9):
    x = inputs.reshape(-1).astype(jnp.float32)
    t = targets.reshape(-1).astype(jnp.float32)
    inter = jnp.sum(x * t)
    dice = (2.0 * inter + smooth) / (jnp.sum(x) + jnp.sum(t) + smooth)
    xc = jnp.clip(x, eps, 1.0 - eps)
    out = -(ALPHA * (t * jnp.log(xc)
                     + (1.0 - ALPHA) * (1.0 - t) * jnp.log(1.0 - xc)))
    weighted_ce = jnp.mean(out)
    return CE_RATIO * weighted_ce - (1.0 - CE_RATIO) * dice


if __name__ == "__main__":
    key = jax.random.PRNGKey(0)
    k1, k2, k3, k4 = jax.random.split(key, 4)

    # Typical segmentation usage: sigmoid probabilities + binary masks.
    N, C, H, W = 2, 4, 16, 16
    inputs = jax.random.uniform(k1, (N, C, H, W), dtype=jnp.float32,
                                minval=0.01, maxval=0.99)
    targets = (jax.random.uniform(k2, (N, C, H, W)) > 0.5).astype(jnp.float32)

    loss = jax.block_until_ready(combo_loss(inputs, targets))
    ref = _reference(inputs, targets)
    assert jnp.allclose(loss, ref, rtol=1e-4, atol=1e-5), (loss, ref)

    # Optional single-log fast path (valid for 0/1 masks).
    loss_bin = jax.block_until_ready(
        combo_loss(inputs, targets, assume_binary_targets=True))
    assert jnp.allclose(loss_bin, ref, rtol=1e-4, atol=1e-5), (loss_bin, ref)

    # Ragged size exercising the in-kernel tail mask (no padded HBM copy):
    # n = 1600 -> cols = 200 -> 128-lane blocks, grid 2, last block 72 valid.
    inputs2 = jax.random.uniform(k3, (2, 800), dtype=jnp.float32,
                                 minval=0.01, maxval=0.99)
    targets2 = (jax.random.uniform(k4, (2, 800)) > 0.5).astype(jnp.float32)
    loss2 = jax.block_until_ready(combo_loss(inputs2, targets2))
    ref2 = _reference(inputs2, targets2)
    assert jnp.allclose(loss2, ref2, rtol=1e-4, atol=1e-5), (loss2, ref2)

    print("KERNEL_OK")
</pallas_src>

<mosaic_0001>
module attributes {stable_mosaic.version = 11 : i64} {
  func.func @_combo_sums_kernel(%arg0: i32, %arg1: memref<8x256xf32, #tpu.memory_space<vmem>>, %arg2: memref<8x256xf32, #tpu.memory_space<vmem>>, %arg3: memref<4xf32, #tpu.memory_space<smem>>, %arg4: memref<8x256xf32, #tpu.memory_space<vmem>>, %arg5: memref<8x256xf32, #tpu.memory_space<vmem>>, %arg6: memref<8x256xf32, #tpu.memory_space<vmem>>, %arg7: memref<8x256xf32, #tpu.memory_space<vmem>>) attributes {dimension_semantics = [#tpu.dimension_semantics<arbitrary>], iteration_bounds = array<i64: 1>, scalar_prefetch = 0 : i64, scratch_operands = 4 : i64, tpu.core_type = #tpu.core_type<tc>, window_params = [{transform_indices = @transform_0, window_bounds = array<i64: 8, 256>}, {transform_indices = @transform_1, window_bounds = array<i64: 8, 256>}, {transform_indices = @transform_2, window_bounds = array<i64: 4>}]} {
    %c0_i32 = arith.constant 0 : i32
    %0 = arith.cmpi eq, %arg0, %c0_i32 : i32
    %1 = arith.extui %0 : i1 to i32
    %c0_i32_0 = arith.constant 0 : i32
    %2 = arith.cmpi ne, %1, %c0_i32_0 : i32
    scf.if %2 {
      %cst_31 = arith.constant 0.000000e+00 : f32
      %46 = vector.broadcast %cst_31 : f32 to vector<8x256xf32>
      %c0_32 = arith.constant 0 : index
      %c0_33 = arith.constant 0 : index
      %47 = vector.load %arg4[%c0_32, %c0_33] : memref<8x256xf32, #tpu.memory_space<vmem>>, vector<8x256xf32>
      tpu.vector_store %arg4[%c0_32, %c0_33], %46 {strides = array<i32>} : memref<8x256xf32, #tpu.memory_space<vmem>>, vector<8x256xf32>,
      %cst_34 = arith.constant 0.000000e+00 : f32
      %48 = vector.broadcast %cst_34 : f32 to vector<8x256xf32>
      %c0_35 = arith.constant 0 : index
      %c0_36 = arith.constant 0 : index
      %49 = vector.load %arg5[%c0_35, %c0_36] : memref<8x256xf32, #tpu.memory_space<vmem>>, vector<8x256xf32>
      tpu.vector_store %arg5[%c0_35, %c0_36], %48 {strides = array<i32>} : memref<8x256xf32, #tpu.memory_space<vmem>>, vector<8x256xf32>,
      %cst_37 = arith.constant 0.000000e+00 : f32
      %50 = vector.broadcast %cst_37 : f32 to vector<8x256xf32>
      %c0_38 = arith.constant 0 : index
      %c0_39 = arith.constant 0 : index
      %51 = vector.load %arg6[%c0_38, %c0_39] : memref<8x256xf32, #tpu.memory_space<vmem>>, vector<8x256xf32>
      tpu.vector_store %arg6[%c0_38, %c0_39], %50 {strides = array<i32>} : memref<8x256xf32, #tpu.memory_space<vmem>>, vector<8x256xf32>,
      %cst_40 = arith.constant 0.000000e+00 : f32
      %52 = vector.broadcast %cst_40 : f32 to vector<8x256xf32>
      %c0_41 = arith.constant 0 : index
      %c0_42 = arith.constant 0 : index
      %53 = vector.load %arg7[%c0_41, %c0_42] : memref<8x256xf32, #tpu.memory_space<vmem>>, vector<8x256xf32>
      tpu.vector_store %arg7[%c0_41, %c0_42], %52 {strides = array<i32>} : memref<8x256xf32, #tpu.memory_space<vmem>>, vector<8x256xf32>,
    } else {
    }
    %cst = arith.constant 0.000000e+00 : f32
    %3 = vector.broadcast %cst : f32 to vector<8x256xf32>
    %cst_1 = arith.constant 0.000000e+00 : f32
    %4 = vector.broadcast %cst_1 : f32 to vector<8x256xf32>
    %cst_2 = arith.constant 0.000000e+00 : f32
    %5 = vector.broadcast %cst_2 : f32 to vector<8x256xf32>
    %cst_3 = arith.constant 0.000000e+00 : f32
    %6 = vector.broadcast %cst_3 : f32 to vector<8x256xf32>
    %c0 = arith.constant 0 : index
    %c0_4 = arith.constant 0 : index
    %7 = vector.load %arg1[%c0, %c0_4] : memref<8x256xf32, #tpu.memory_space<vmem>>, vector<8x256xf32>
    %c0_5 = arith.constant 0 : index
    %c0_6 = arith.constant 0 : index
    %8 = vector.load %arg2[%c0_5, %c0_6] : memref<8x256xf32, #tpu.memory_space<vmem>>, vector<8x256xf32>
    %cst_7 = arith.constant 9.99999971E-10 : f32
    %cst_8 = arith.constant 1.000000e+00 : f32
    %9 = vector.broadcast %cst_7 : f32 to vector<8x256xf32>
    %10 = arith.maximumf %9, %7 : vector<8x256xf32>
    %11 = vector.broadcast %cst_8 : f32 to vector<8x256xf32>
    %12 = arith.minimumf %11, %10 : vector<8x256xf32>
    %13 = math.log %12 : vector<8x256xf32>
    %14 = arith.mulf %8, %13 : vector<8x256xf32>
    %cst_9 = arith.constant -5.000000e-01 : f32
    %15 = vector.broadcast %cst_9 : f32 to vector<8x256xf32>
    %16 = arith.mulf %15, %14 : vector<8x256xf32>
    %cst_10 = arith.constant 1.000000e+00 : f32
    %17 = vector.broadcast %cst_10 : f32 to vector<8x256xf32>
    %18 = arith.subf %17, %8 : vector<8x256xf32>
    %cst_11 = arith.constant 1.000000e+00 : f32
    %19 = vector.broadcast %cst_11 : f32 to vector<8x256xf32>
    %20 = arith.subf %19, %12 : vector<8x256xf32>
    %21 = math.log %20 : vector<8x256xf32>
    %22 = arith.mulf %18, %21 : vector<8x256xf32>
    %cst_12 = arith.constant -2.500000e-01 : f32
    %23 = vector.broadcast %cst_12 : f32 to vector<8x256xf32>
    %24 = arith.mulf %23, %22 : vector<8x256xf32>
    %25 = arith.addf %16, %24 : vector<8x256xf32>
    %26 = arith.mulf %7, %8 : vector<8x256xf32>
    %27 = arith.addf %3, %26 : vector<8x256xf32>
    %28 = arith.addf %4, %7 : vector<8x256xf32>
    %29 = arith.addf %5, %8 : vector<8x256xf32>
    %30 = arith.addf %6, %25 : vector<8x256xf32>
    %c0_13 = arith.constant 0 : index
    %c0_14 = arith.constant 0 : index
    %31 = vector.load %arg4[%c0_13, %c0_14] : memref<8x256xf32, #tpu.memory_space<vmem>>, vector<8x256xf32>
    %32 = arith.addf %31, %27 : vector<8x256xf32>
    %c0_15 = arith.constant 0 : index
    %c0_16 = arith.constant 0 : index
    %33 = vector.load %arg4[%c0_15, %c0_16] : memref<8x256xf32, #tpu.memory_space<vmem>>, vector<8x256xf32>
    tpu.vector_store %arg4[%c0_15, %c0_16], %32 {strides = array<i32>} : memref<8x256xf32, #tpu.memory_space<vmem>>, vector<8x256xf32>,
    %c0_17 = arith.constant 0 : index
    %c0_18 = arith.constant 0 : index
    %34 = vector.load %arg5[%c0_17, %c0_18] : memref<8x256xf32, #tpu.memory_space<vmem>>, vector<8x256xf32>
    %35 = arith.addf %34, %28 : vector<8x256xf32>
    %c0_19 = arith.constant 0 : index
    %c0_20 = arith.constant 0 : index
    %36 = vector.load %arg5[%c0_19, %c0_20] : memref<8x256xf32, #tpu.memory_space<vmem>>, vector<8x256xf32>
    tpu.vector_store %arg5[%c0_19, %c0_20], %35 {strides = array<i32>} : memref<8x256xf32, #tpu.memory_space<vmem>>, vector<8x256xf32>,
    %c0_21 = arith.constant 0 : index
    %c0_22 = arith.constant 0 : index
    %37 = vector.load %arg6[%c0_21, %c0_22] : memref<8x256xf32, #tpu.memory_space<vmem>>, vector<8x256xf32>
    %38 = arith.addf %37, %29 : vector<8x256xf32>
    %c0_23 = arith.constant 0 : index
    %c0_24 = arith.constant 0 : index
    %39 = vector.load %arg6[%c0_23, %c0_24] : memref<8x256xf32, #tpu.memory_space<vmem>>, vector<8x256xf32>
    tpu.vector_store %arg6[%c0_23, %c0_24], %38 {strides = array<i32>} : memref<8x256xf32, #tpu.memory_space<vmem>>, vector<8x256xf32>,
    %c0_25 = arith.constant 0 : index
    %c0_26 = arith.constant 0 : index
    %40 = vector.load %arg7[%c0_25, %c0_26] : memref<8x256xf32, #tpu.memory_space<vmem>>, vector<8x256xf32>
    %41 = arith.addf %40, %30 : vector<8x256xf32>
    %c0_27 = arith.constant 0 : index
    %c0_28 = arith.constant 0 : index
    %42 = vector.load %arg7[%c0_27, %c0_28] : memref<8x256xf32, #tpu.memory_space<vmem>>, vector<8x256xf32>
    tpu.vector_store %arg7[%c0_27, %c0_28], %41 {strides = array<i32>} : memref<8x256xf32, #tpu.memory_space<vmem>>, vector<8x256xf32>,
    %c0_i32_29 = arith.constant 0 : i32
    %43 = arith.cmpi eq, %arg0, %c0_i32_29 : i32
    %44 = arith.extui %43 : i1 to i32
    %c0_i32_30 = arith.constant 0 : i32
    %45 = arith.cmpi ne, %44, %c0_i32_30 : i32
    scf.if %45 {
      %c0_31 = arith.constant 0 : index
      %c0_32 = arith.constant 0 : index
      %46 = vector.load %arg4[%c0_31, %c0_32] : memref<8x256xf32, #tpu.memory_space<vmem>>, vector<8x256xf32>
      %47 = vector.shape_cast %46 : vector<8x256xf32> to vector<1x8x256xf32>
      %cst_33 = arith.constant dense<0.000000e+00> : vector<1xf32>
      %48 = vector.multi_reduction <add>, %47, %cst_33 [1, 2] : vector<1x8x256xf32> to vector<1xf32>
      %49 = vector.shape_cast %48 : vector<1xf32> to vector<1x1x1xf32>
      %50 = vector.extract %49[0, 0, 0] : f32 from vector<1x1x1xf32>
      %c0_34 = arith.constant 0 : index
      %51 = memref.load %arg3[%c0_34] : memref<4xf32, #tpu.memory_space<smem>>
      memref.store %50, %arg3[%c0_34] : memref<4xf32, #tpu.memory_space<smem>>
      %c0_35 = arith.constant 0 : index
      %c0_36 = arith.constant 0 : index
      %52 = vector.load %arg5[%c0_35, %c0_36] : memref<8x256xf32, #tpu.memory_space<vmem>>, vector<8x256xf32>
      %53 = vector.shape_cast %52 : vector<8x256xf32> to vector<1x8x256xf32>
      %cst_37 = arith.constant dense<0.000000e+00> : vector<1xf32>
      %54 = vector.multi_reduction <add>, %53, %cst_37 [1, 2] : vector<1x8x256xf32> to vector<1xf32>
      %55 = vector.shape_cast %54 : vector<1xf32> to vector<1x1x1xf32>
      %56 = vector.extract %55[0, 0, 0] : f32 from vector<1x1x1xf32>
      %c1 = arith.constant 1 : index
      %57 = memref.load %arg3[%c1] : memref<4xf32, #tpu.memory_space<smem>>
      memref.store %56, %arg3[%c1] : memref<4xf32, #tpu.memory_space<smem>>
      %c0_38 = arith.constant 0 : index
      %c0_39 = arith.constant 0 : index
      %58 = vector.load %arg6[%c0_38, %c0_39] : memref<8x256xf32, #tpu.memory_space<vmem>>, vector<8x256xf32>
      %59 = vector.shape_cast %58 : vector<8x256xf32> to vector<1x8x256xf32>
      %cst_40 = arith.constant dense<0.000000e+00> : vector<1xf32>
      %60 = vector.multi_reduction <add>, %59, %cst_40 [1, 2] : vector<1x8x256xf32> to vector<1xf32>
      %61 = vector.shape_cast %60 : vector<1xf32> to vector<1x1x1xf32>
      %62 = vector.extract %61[0, 0, 0] : f32 from vector<1x1x1xf32>
      %c2 = arith.constant 2 : index
      %63 = memref.load %arg3[%c2] : memref<4xf32, #tpu.memory_space<smem>>
      memref.store %62, %arg3[%c2] : memref<4xf32, #tpu.memory_space<smem>>
      %c0_41 = arith.constant 0 : index
      %c0_42 = arith.constant 0 : index
      %64 = vector.load %arg7[%c0_41, %c0_42] : memref<8x256xf32, #tpu.memory_space<vmem>>, vector<8x256xf32>
      %65 = vector.shape_cast %64 : vector<8x256xf32> to vector<1x8x256xf32>
      %cst_43 = arith.constant dense<0.000000e+00> : vector<1xf32>
      %66 = vector.multi_reduction <add>, %65, %cst_43 [1, 2] : vector<1x8x256xf32> to vector<1xf32>
      %67 = vector.shape_cast %66 : vector<1xf32> to vector<1x1x1xf32>
      %68 = vector.extract %67[0, 0, 0] : f32 from vector<1x1x1xf32>
      %c3 = arith.constant 3 : index
      %69 = memref.load %arg3[%c3] : memref<4xf32, #tpu.memory_space<smem>>
      memref.store %68, %arg3[%c3] : memref<4xf32, #tpu.memory_space<smem>>
    } else {
    }
    return
  }
  func.func @transform_0(%arg0: i32) -> (i32, i32) {
    %c0_i32 = arith.constant 0 : i32
    %c0_i32_0 = arith.constant 0 : i32
    return %c0_i32, %arg0 : i32, i32
  }
  func.func @transform_1(%arg0: i32) -> (i32, i32) {
    %c0_i32 = arith.constant 0 : i32
    %c0_i32_0 = arith.constant 0 : i32
    return %c0_i32, %arg0 : i32, i32
  }
  func.func @transform_2(%arg0: i32) -> i32 {
    %c0_i32 = arith.constant 0 : i32
    %c0_i32_0 = arith.constant 0 : i32
    return %c0_i32 : i32
  }
}

</mosaic_0001>

<bundles_post_ra>
// kernel: tpu_custom_call.1
= control target key start
LH: loop header
LB: loop body
LE: loop exit
PB: predicated region body
PF: predicated region fallthrough
CT: control target
= control target key end

     0   :  { %7 = vsyncpa [#allocation7], 0  ;;  %s304_s0 = inlined_call_operand.hbm [shape: f32[8,256], index: 0, kind: input, shape index: {}]   ;;  %s305_s1 = inlined_call_operand.hbm [shape: f32[8,256], index: 1, kind: input, shape index: {}]   ;;  %s306_s2 = inlined_call_operand.hbm [shape: f32[4], index: 2, kind: output, shape index: {}]  }
   0x1   :  { %8 = vsyncpa [#allocation10], 0 }
   0x2   :  { %9 = vsyncpa [#allocation8], 0  ;;  %s15_s11 = sshll.u32 %s304_s0, 4  ;;  %s277_s12 = smov [#allocation6]   ;;  %s16_s11 = int_to_ptr.hbm [resolvable:$true] %s15_s11 }
   0x3   :  { %s17_s13 = sshll.u32 %s277_s12, 4  ;;  %s26_s16 = sshll.u32 %s305_s1, 4  ;;  %s18_s13 = int_to_ptr.vmem [resolvable:$true] %s17_s13  ;;  %s27_s16 = int_to_ptr.hbm [resolvable:$true] %s26_s16 }
   0x4   :  { %20 = dma.hbm_to_vmem [thread:$0]  %s16_s11, 256, %s18_s13, [#allocation7]  }
   0x5   :  { %s278_s17 = smov [#allocation9]  }
   0x6   :  { %s28_s18 = sshll.u32 %s278_s17, 4  ;;  %s29_s18 = int_to_ptr.vmem [resolvable:$true] %s28_s18 }
   0x7   :  { %31 = dma.hbm_to_vmem [thread:$0]  %s27_s16, 256, %s29_s18, [#allocation10]  }
   0x8   :  { %271 = dma.done.wait [#allocation7], 256  }
   0x9   :  { %272 = vsyncadd [#allocation7], 4294967040 }
   0xa   :  { %273 = dma.done.wait [#allocation10], 256  }
   0xb   :  { %274 = vsyncadd [#allocation10], 4294967040  ;;  %v52_v0 = vld [vmem:[#allocation6] sm:$0xff]  ;;  %v53_v1 = vld [vmem:[#allocation6 + $0x8] sm:$0xff]  ;;  %s180_s22 = sshll.u32 %s306_s2, 4  ;;  %s279_s24 = smov [#allocation11]   ;;  %s181_s22 = int_to_ptr.hbm [resolvable:$true] %s180_s22 }
   0xc   :  { %v54_v2 = vld [vmem:[#allocation9] sm:$0xff]  ;;  %v55_v3 = vld [vmem:[#allocation9 + $0x8] sm:$0xff]  ;;  %v57_v4 = vmax.f32 %v53_v1, 1e-09  ;;  %v56_v6 = vmax.f32 %v52_v0, 1e-09  ;;  %v135_v14 = vadd.f32 %v53_v1, %v52_v0 }
   0xd   :  { %v82_v5 = vmul.f32 %v54_v2, %v52_v0  ;;  %v83_v7 = vmul.f32 %v55_v3, %v53_v1  ;;  %v149_v8 = vadd.f32 %v55_v3, %v54_v2  ;;  %v69_v18 = vsub.f32 1.0, %v55_v3 }
   0xe   :  { %v59_v9 = vmin.f32 %v57_v4, 1.0  ;;  %v58_v10 = vmin.f32 %v56_v6, 1.0  ;;  %v68_v21 = vsub.f32 1.0, %v54_v2 }
   0xf   :  { %v121_v11 = vadd.f32 %v83_v7, %v82_v5  ;;  %150 = vadd.xlane.f32.xlu1 %v149_v8 }
  0x10   :  { %203 = vlog2.f32 %v59_v9  ;;  %v71_v12 = vsub.f32 1.0, %v59_v9  ;;  %v70_v13 = vsub.f32 1.0, %v58_v10 }
  0x11   :  { %122 = vadd.xlane.f32.xlu0 %v121_v11  ;;  %205 = vlog2.f32 %v58_v10 }
  0x12   :  { %207 = vlog2.f32 %v71_v12 }
  0x13   :  { %209 = vlog2.f32 %v70_v13 }
  0x16   :  { %v204_v15 = vpop.eup %203 }
  0x17   :  { %v206_v16 = vpop.eup %205  ;;  %v63_v17 = vmul.f32 0.6931472, %v204_v15 }
  0x18   :  { %v208_v19 = vpop.eup %207  ;;  %v61_v20 = vmul.f32 0.6931472, %v206_v16 }
  0x19   :  { %v210_v22 = vpop.eup %209  ;;  %136 = vadd.xlane.f32.xlu0 %v135_v14  ;;  %v65_v23 = vmul.f32 %v63_v17, %v55_v3  ;;  %v75_v24 = vmul.f32 0.6931472, %v208_v19 }
  0x1a   :  { %v64_v25 = vmul.f32 %v61_v20, %v54_v2  ;;  %v73_v26 = vmul.f32 0.6931472, %v210_v22 }
  0x1b   :  { %v67_v27 = vmul.f32 -0.5, %v65_v23  ;;  %v77_v28 = vmul.f32 %v75_v24, %v69_v18 }
  0x1c   :  { %v66_v29 = vmul.f32 -0.5, %v64_v25  ;;  %v76_v30 = vmul.f32 %v73_v26, %v68_v21 }
  0x1d   :  { %v79_v31 = vmul.f32 -0.25, %v77_v28 }
  0x1e   :  { %v78_v32 = vmul.f32 -0.25, %v76_v30 }
  0x1f   :  { %v81_v33 = vadd.f32 %v79_v31, %v67_v27 }
  0x20   :  { %v80_v34 = vadd.f32 %v78_v32, %v66_v29 }
  0x22   :  { %v163_v35 = vadd.f32 %v81_v33, %v80_v34 }
  0x24   :  { %164 = vadd.xlane.f32.xlu1 %v163_v35 }
  0x82   :  { %v151_v36 = vpop.xlane.xlu1 %150 }
  0x83   :  { %v152_v38 = vrot.slane %v151_v36, 4 }
  0x84   :  { %v123_v37 = vpop.xlane.xlu0 %122 }
  0x85   :  { %v124_v39 = vrot.slane %v123_v37, 4  ;;  %v153_v41 = vadd.f32 %v152_v38, %v151_v36 }
  0x87   :  { %v125_v40 = vadd.f32 %v124_v39, %v123_v37  ;;  %v154_v44 = vrot.slane %v153_v41, 2 }
  0x89   :  { %v126_v42 = vrot.slane %v125_v40, 2  ;;  %v155_v50 = vadd.f32 %v154_v44, %v153_v41 }
  0x8b   :  { %v127_v43 = vadd.f32 %v126_v42, %v125_v40  ;;  %v156_v53 = vrot.slane %v155_v50, 1 }
  0x8c   :  { %v137_v45 = vpop.xlane.xlu0 %136 }
  0x8d   :  { %v138_v46 = vrot.slane %v137_v45, 4  ;;  %v128_v47 = vrot.slane %v127_v43, 1  ;;  %v157_v58 = vadd.f32 %v156_v53, %v155_v50 }
  0x8f   :  { %v139_v48 = vadd.f32 %v138_v46, %v137_v45  ;;  %v129_v49 = vadd.f32 %v128_v47, %v127_v43 }
  0x91   :  { %v140_v51 = vrot.slane %v139_v48, 2  ;;  %192 = vpush %v129_v49 }
  0x93   :  { %v141_v52 = vadd.f32 %v140_v51, %v139_v48 }
  0x95   :  { %v142_v54 = vrot.slane %v141_v52, 1 }
  0x97   :  { %v165_v55 = vpop.xlane.xlu1 %164  ;;  %v143_v56 = vadd.f32 %v142_v54, %v141_v52 }
  0x98   :  { %v166_v57 = vrot.slane %v165_v55, 4 }
  0x99   :  { %194 = vpush %v143_v56 }
  0x9a   :  { %v167_v59 = vadd.f32 %v166_v57, %v165_v55  ;;  %196 = vpush %v157_v58 }
  0x9c   :  { %v168_v60 = vrot.slane %v167_v59, 2 }
  0x9e   :  { %v169_v61 = vadd.f32 %v168_v60, %v167_v59 }
  0xa0   :  { %v170_v62 = vrot.slane %v169_v61, 1 }
  0xa2   :  { %v171_v63 = vadd.f32 %v170_v62, %v169_v61 }
  0xa4   :  { %198 = vpush %v171_v63 }
  0xc2   :  { %s193_s0 = spop %192 }
  0xc3   :  { %132 = sst [smem:[#allocation11]] %s193_s0 }
  0xca   :  { %s195_s1 = spop %194 }
  0xcb   :  { %146 = sst [smem:[#allocation11 + $0x1]] %s195_s1  ;;  %s197_s19 = spop %196 }
  0xcc   :  { %160 = sst [smem:[#allocation11 + $0x2]] %s197_s19 }
  0xd5   :  { %s199_s23 = spop %198 }
  0xd6   :  { %174 = sst [smem:[#allocation11 + $0x3]] %s199_s23 }
  0xd7   :  { %183 = dma.smem_to_hbm %s279_s24, 16, %s181_s22, [#allocation8]  }
  0xd8   :  { %275 = dma.done.wait [#allocation8], 16  }
  0xd9   :  { %276 = vsyncadd [#allocation8], 4294967280 }
  0xda   :  { %188 = sfence }
  0xdb   :  { %189 = vsyncpa [#allocation7], 1 }
  0xdc   :  { %190 = vsyncpa [#allocation10], 1 }
  0xdd   :  { %191 = vsyncpa [#allocation8], 1 }

</bundles_post_ra>
